<compile_context>
chip_gen: v6e
topology: v6e:2x2x1
jax: 0.10.0
libtpu: 0.0.40
codegen_flags: <defaults>
</compile_context>

<pallas_src>
import functools
import math

import jax
import jax.numpy as jnp
from jax.experimental import pallas as pl
from jax.experimental.pallas import tpu as pltpu

HP = 128  # per-gate lane-tile width (each GRU gate padded to one 128-lane tile)


def cnnrnn_res_kernel(ratio, residual_window, P,
                      x_ref, adjmask_ref, wih_ref, whh_ref, bias_ref,
                      lin_ref, resid_ref, out_ref):
    Bp, m = out_ref.shape                       # padded batch rows per timestep
    H = whh_ref.shape[0]                        # hidden size
    hp = whh_ref.shape[1] // 3                  # = HP (per-gate lane tile)

    # masked adjacency + spatial mixing:  x @ (adj * mask)   (time-major rows)
    masked_adj = adjmask_ref[0:m, :] * adjmask_ref[m:2 * m, :]          # (m, m)
    xm = jnp.dot(x_ref[...], masked_adj,
                 preferred_element_type=jnp.float32)                   # (P*Bp, m)

    # Hoisted, gate-fused input projection: one MXU pass for all timesteps and
    # all three gates; each gate lives in its own 128-lane tile.
    gx = jnp.dot(xm, wih_ref[...], preferred_element_type=jnp.float32) \
        + bias_ref[0:1, 0:3 * hp]                                      # (P*Bp, 3*HP)

    whh = whh_ref[...]                                                 # (H, 3*HP)
    bhh_n = bias_ref[0:1, 3 * hp:3 * hp + H]                           # (1, H)

    # Sequential h-recurrence (PyTorch nn.GRU gate order r, z, n).
    # One fused (H x 3*HP) matmul per step; gate slices start on lane-tile
    # boundaries (0, 128, 256) and sublane offsets t*8 are tile-aligned.
    h = jnp.zeros((Bp, H), jnp.float32)
    for t in range(P):                          # P small & static -> unrolled
        lo = t * Bp
        gh = jnp.dot(h, whh, preferred_element_type=jnp.float32)       # (Bp, 3*HP)
        r_g = jax.nn.sigmoid(gx[lo:lo + Bp, 0:H] + gh[:, 0:H])
        z_g = jax.nn.sigmoid(gx[lo:lo + Bp, hp:hp + H] + gh[:, hp:hp + H])
        n_g = jnp.tanh(gx[lo:lo + Bp, 2 * hp:2 * hp + H]
                       + r_g * (gh[:, 2 * hp:2 * hp + H] + bhh_n))
        h = (1.0 - z_g) * n_g + z_g * h

    # TODO(synk): nn.Dropout is identity in eval mode; training-mode dropout not implemented.
    res = jnp.dot(h, lin_ref[0:H, :], preferred_element_type=jnp.float32) \
        + lin_ref[H:H + 1, :]                                          # (Bp, m)

    if residual_window > 0:
        # residual head: per-series Linear(rw -> 1) over the last rw timesteps,
        # unrolled as SMEM-scalar MACs on sublane-aligned xm slices.
        z_out = jnp.zeros((Bp, m), jnp.float32)
        for t in range(residual_window):
            lo = (P - residual_window + t) * Bp
            z_out = z_out + resid_ref[t] * xm[lo:lo + Bp, :]
        res = res * ratio + z_out + resid_ref[residual_window]

    out_ref[...] = jax.nn.sigmoid(res)          # output_fun == 'sigmoid'


def cnnrnn_res_forward(x, adj, mask, wih, whh, bih, bhh, w1, b1, wres, bres,
                       *, ratio, residual_window):
    B, P, m = x.shape
    H = whh.shape[1]                            # whh is (3H, H) -> hidden size
    Bp = ((B + 7) // 8) * 8                     # pad batch rows to sublane tile

    # time-major, batch padded to Bp, flattened: row t*Bp + b holds x[b, t, :]
    xT = jnp.transpose(x, (1, 0, 2))                              # (P, B, m)
    xT = jnp.pad(xT, ((0, 0), (0, Bp - B), (0, 0)))               # (P, Bp, m)
    x2 = xT.reshape(P * Bp, m).astype(jnp.float32)

    # adj and mask stacked into one slab (mask multiply stays in-kernel).
    adjmask = jnp.concatenate([adj, mask], axis=0).astype(jnp.float32)   # (2m, m)

    # Gate-fused, lane-tile-padded GRU weights (done once at the JAX level).
    def pad_gate(w):                                               # (K, H) -> (K, HP)
        return jnp.pad(w, ((0, 0), (0, HP - H)))

    wih_fused = jnp.concatenate(
        [pad_gate(wih[0:H].T), pad_gate(wih[H:2 * H].T), pad_gate(wih[2 * H:].T)],
        axis=1).astype(jnp.float32)                                # (m, 3*HP)
    whh_fused = jnp.concatenate(
        [pad_gate(whh[0:H].T), pad_gate(whh[H:2 * H].T), pad_gate(whh[2 * H:].T)],
        axis=1).astype(jnp.float32)                                # (H, 3*HP)

    # Single bias row: [r | z | n_input | n_hidden], each gate in its own tile.
    bias = jnp.zeros((1, 4 * HP), jnp.float32)
    bias = bias.at[0, 0:H].set(bih[0:H] + bhh[0:H])
    bias = bias.at[0, HP:HP + H].set(bih[H:2 * H] + bhh[H:2 * H])
    bias = bias.at[0, 2 * HP:2 * HP + H].set(bih[2 * H:])
    bias = bias.at[0, 3 * HP:3 * HP + H].set(bhh[2 * H:])

    # linear1 slab: rows [0:H) = w1.T, row H = b1, remaining rows zero padding.
    lin = jnp.zeros((H + 8, m), jnp.float32)
    lin = lin.at[0:H, :].set(w1.T)
    lin = lin.at[H, :].set(b1)

    # residual scalars in SMEM: resid[t] multiplies timestep P - rw + t
    # (matches wres layout used by the reference view(-1, rw) @ wres.T).
    if residual_window > 0:
        assert wres.shape == (1, residual_window)
        resid = jnp.concatenate(
            [wres.reshape(-1), bres.reshape(-1)]).astype(jnp.float32)
    else:
        resid = jnp.zeros((1,), jnp.float32)

    kernel = functools.partial(cnnrnn_res_kernel, ratio, residual_window, P)

    vmem = pl.BlockSpec(memory_space=pltpu.MemorySpace.VMEM)
    smem = pl.BlockSpec(memory_space=pltpu.MemorySpace.SMEM)
    # Tiny shapes: everything fits in VMEM -> single ungridded call.  For large
    # batched workloads, grid over batch with dimension_semantics=("parallel",)
    # to use both v7x TensorCores.
    out = pl.pallas_call(
        kernel,
        out_shape=jax.ShapeDtypeStruct((Bp, m), jnp.float32),
        in_specs=[vmem] * 6 + [smem],
        out_specs=vmem,
    )(x2, adjmask, wih_fused, whh_fused, bias, lin, resid)
    return out[:B]


def reference_forward(x, adj, mask, wih, whh, bih, bhh, w1, b1, wres, bres,
                      *, ratio, residual_window):
    """Pure-JAX reference mirroring the PyTorch forward (eval mode)."""
    B, P, m = x.shape
    H = whh.shape[1]
    xm = jnp.einsum('bpm,mn->bpn', x, adj * mask)
    h = jnp.zeros((B, H), jnp.float32)
    for t in range(P):
        gx = xm[:, t, :] @ wih.T + bih
        gh = h @ whh.T + bhh
        r_g = jax.nn.sigmoid(gx[:, :H] + gh[:, :H])
        z_g = jax.nn.sigmoid(gx[:, H:2 * H] + gh[:, H:2 * H])
        n_g = jnp.tanh(gx[:, 2 * H:] + r_g * gh[:, 2 * H:])
        h = (1 - z_g) * n_g + z_g * h
    res = h @ w1.T + b1
    if residual_window > 0:
        z = xm[:, P - residual_window:, :]
        z = jnp.transpose(z, (0, 2, 1)).reshape(-1, residual_window)
        z = (z @ wres.T + bres).reshape(B, m)
        res = res * ratio + z
    return jax.nn.sigmoid(res)


if __name__ == "__main__":
    # Hyper-params implied by the module (small, deterministic)
    B, P, m, hidR = 2, 8, 16, 32
    residual_window = min(4, P)
    ratio = 0.7

    key = jax.random.PRNGKey(0)
    ks = jax.random.split(key, 10)

    x = jax.random.normal(ks[0], (B, P, m), jnp.float32)
    adj = jax.random.uniform(ks[1], (m, m), jnp.float32)
    mask = jnp.ones((m, m), jnp.float32)                      # mask_mat init = ones

    sg = 1.0 / math.sqrt(hidR)                                # GRU init scale
    wih = jax.random.uniform(ks[2], (3 * hidR, m), jnp.float32, -sg, sg)
    whh = jax.random.uniform(ks[3], (3 * hidR, hidR), jnp.float32, -sg, sg)
    bih = jax.random.uniform(ks[4], (3 * hidR,), jnp.float32, -sg, sg)
    bhh = jax.random.uniform(ks[5], (3 * hidR,), jnp.float32, -sg, sg)

    s1 = 1.0 / math.sqrt(hidR)                                # linear1: hidR -> m
    w1 = jax.random.uniform(ks[6], (m, hidR), jnp.float32, -s1, s1)
    b1 = jax.random.uniform(ks[7], (m,), jnp.float32, -s1, s1)

    sr = 1.0 / math.sqrt(residual_window)                     # residual: rw -> 1
    wres = jax.random.uniform(ks[8], (1, residual_window), jnp.float32, -sr, sr)
    bres = jax.random.uniform(ks[9], (1,), jnp.float32, -sr, sr)

    out = cnnrnn_res_forward(x, adj, mask, wih, whh, bih, bhh, w1, b1, wres, bres,
                             ratio=ratio, residual_window=residual_window)
    out = jax.block_until_ready(out)

    ref = reference_forward(x, adj, mask, wih, whh, bih, bhh, w1, b1, wres, bres,
                            ratio=ratio, residual_window=residual_window)
    assert out.shape == (B, m)
    assert jnp.allclose(out, ref, atol=1e-4, rtol=1e-4), "mismatch vs JAX reference"
    print("KERNEL_OK")
</pallas_src>

<mosaic_0001>
module attributes {stable_mosaic.version = 11 : i64} {
  func.func @cnnrnn_res_kernel(%arg0: memref<64x16xf32, #tpu.memory_space<vmem>>, %arg1: memref<32x16xf32, #tpu.memory_space<vmem>>, %arg2: memref<16x384xf32, #tpu.memory_space<vmem>>, %arg3: memref<32x384xf32, #tpu.memory_space<vmem>>, %arg4: memref<1x512xf32, #tpu.memory_space<vmem>>, %arg5: memref<40x16xf32, #tpu.memory_space<vmem>>, %arg6: memref<5xf32, #tpu.memory_space<smem>>, %arg7: memref<8x16xf32, #tpu.memory_space<vmem>>) attributes {dimension_semantics = [], scalar_prefetch = 0 : i64, scratch_operands = 0 : i64, tpu.core_type = #tpu.core_type<tc>} {
    %c0 = arith.constant 0 : index
    %c0_0 = arith.constant 0 : index
    %0 = vector.load %arg1[%c0, %c0_0] : memref<32x16xf32, #tpu.memory_space<vmem>>, vector<16x16xf32>
    %c16 = arith.constant 16 : index
    %c0_1 = arith.constant 0 : index
    %1 = vector.load %arg1[%c16, %c0_1] : memref<32x16xf32, #tpu.memory_space<vmem>>, vector<16x16xf32>
    %2 = arith.mulf %0, %1 : vector<16x16xf32>
    %c0_2 = arith.constant 0 : index
    %c0_3 = arith.constant 0 : index
    %3 = vector.load %arg0[%c0_2, %c0_3] : memref<64x16xf32, #tpu.memory_space<vmem>>, vector<64x16xf32>
    %cst = arith.constant dense<0.000000e+00> : vector<64x16xf32>
    %4 = tpu.matmul %3, %2, %cst {dimension_numbers = #tpu.dot_dimension_numbers<[1], [0], [0], [1], [0, 0, 1, 1], [], []>} : vector<64x16xf32>, vector<16x16xf32>, vector<64x16xf32> -> vector<64x16xf32>
    %c0_4 = arith.constant 0 : index
    %c0_5 = arith.constant 0 : index
    %5 = vector.load %arg2[%c0_4, %c0_5] : memref<16x384xf32, #tpu.memory_space<vmem>>, vector<16x384xf32>
    %cst_6 = arith.constant dense<0.000000e+00> : vector<64x384xf32>
    %6 = tpu.matmul %4, %5, %cst_6 {dimension_numbers = #tpu.dot_dimension_numbers<[1], [0], [0], [1], [0, 0, 1, 1], [], []>} : vector<64x16xf32>, vector<16x384xf32>, vector<64x384xf32> -> vector<64x384xf32>
    %c0_7 = arith.constant 0 : index
    %c0_8 = arith.constant 0 : index
    %7 = vector.load %arg4[%c0_7, %c0_8] : memref<1x512xf32, #tpu.memory_space<vmem>>, vector<1x384xf32>
    %8 = vector.broadcast %7 : vector<1x384xf32> to vector<64x384xf32>
    %9 = arith.addf %6, %8 : vector<64x384xf32>
    %c0_9 = arith.constant 0 : index
    %c0_10 = arith.constant 0 : index
    %10 = vector.load %arg3[%c0_9, %c0_10] : memref<32x384xf32, #tpu.memory_space<vmem>>, vector<32x384xf32>
    %c0_11 = arith.constant 0 : index
    %c384 = arith.constant 384 : index
    %11 = vector.load %arg4[%c0_11, %c384] : memref<1x512xf32, #tpu.memory_space<vmem>>, vector<1x32xf32>
    %cst_12 = arith.constant 0.000000e+00 : f32
    %12 = vector.broadcast %cst_12 : f32 to vector<8x32xf32>
    %cst_13 = arith.constant dense<0.000000e+00> : vector<8x384xf32>
    %13 = tpu.matmul %12, %10, %cst_13 {dimension_numbers = #tpu.dot_dimension_numbers<[1], [0], [0], [1], [0, 0, 1, 1], [], []>} : vector<8x32xf32>, vector<32x384xf32>, vector<8x384xf32> -> vector<8x384xf32>
    %14 = vector.extract_strided_slice %9 {offsets = [0, 0], sizes = [8, 32], strides = [1, 1]} : vector<64x384xf32> to vector<8x32xf32>
    %15 = vector.extract_strided_slice %13 {offsets = [0, 0], sizes = [8, 32], strides = [1, 1]} : vector<8x384xf32> to vector<8x32xf32>
    %16 = arith.addf %14, %15 : vector<8x32xf32>
    %17 = arith.negf %16 : vector<8x32xf32>
    %18 = math.exp %17 : vector<8x32xf32>
    %cst_14 = arith.constant 1.000000e+00 : f32
    %19 = vector.broadcast %cst_14 : f32 to vector<8x32xf32>
    %20 = arith.addf %19, %18 : vector<8x32xf32>
    %21 = arith.divf %19, %20 : vector<8x32xf32>
    %22 = vector.extract_strided_slice %9 {offsets = [0, 128], sizes = [8, 32], strides = [1, 1]} : vector<64x384xf32> to vector<8x32xf32>
    %23 = vector.extract_strided_slice %13 {offsets = [0, 128], sizes = [8, 32], strides = [1, 1]} : vector<8x384xf32> to vector<8x32xf32>
    %24 = arith.addf %22, %23 : vector<8x32xf32>
    %25 = arith.negf %24 : vector<8x32xf32>
    %26 = math.exp %25 : vector<8x32xf32>
    %cst_15 = arith.constant 1.000000e+00 : f32
    %27 = vector.broadcast %cst_15 : f32 to vector<8x32xf32>
    %28 = arith.addf %27, %26 : vector<8x32xf32>
    %29 = arith.divf %27, %28 : vector<8x32xf32>
    %30 = vector.extract_strided_slice %9 {offsets = [0, 256], sizes = [8, 32], strides = [1, 1]} : vector<64x384xf32> to vector<8x32xf32>
    %31 = vector.extract_strided_slice %13 {offsets = [0, 256], sizes = [8, 32], strides = [1, 1]} : vector<8x384xf32> to vector<8x32xf32>
    %32 = vector.broadcast %11 : vector<1x32xf32> to vector<8x32xf32>
    %33 = arith.addf %31, %32 : vector<8x32xf32>
    %34 = arith.mulf %21, %33 : vector<8x32xf32>
    %35 = arith.addf %30, %34 : vector<8x32xf32>
    %36 = math.tanh %35 : vector<8x32xf32>
    %cst_16 = arith.constant 1.000000e+00 : f32
    %37 = vector.broadcast %cst_16 : f32 to vector<8x32xf32>
    %38 = arith.subf %37, %29 : vector<8x32xf32>
    %39 = arith.mulf %38, %36 : vector<8x32xf32>
    %40 = arith.mulf %29, %12 : vector<8x32xf32>
    %41 = arith.addf %39, %40 : vector<8x32xf32>
    %cst_17 = arith.constant dense<0.000000e+00> : vector<8x384xf32>
    %42 = tpu.matmul %41, %10, %cst_17 {dimension_numbers = #tpu.dot_dimension_numbers<[1], [0], [0], [1], [0, 0, 1, 1], [], []>} : vector<8x32xf32>, vector<32x384xf32>, vector<8x384xf32> -> vector<8x384xf32>
    %43 = vector.extract_strided_slice %9 {offsets = [8, 0], sizes = [8, 32], strides = [1, 1]} : vector<64x384xf32> to vector<8x32xf32>
    %44 = vector.extract_strided_slice %42 {offsets = [0, 0], sizes = [8, 32], strides = [1, 1]} : vector<8x384xf32> to vector<8x32xf32>
    %45 = arith.addf %43, %44 : vector<8x32xf32>
    %46 = arith.negf %45 : vector<8x32xf32>
    %47 = math.exp %46 : vector<8x32xf32>
    %cst_18 = arith.constant 1.000000e+00 : f32
    %48 = vector.broadcast %cst_18 : f32 to vector<8x32xf32>
    %49 = arith.addf %48, %47 : vector<8x32xf32>
    %50 = arith.divf %48, %49 : vector<8x32xf32>
    %51 = vector.extract_strided_slice %9 {offsets = [8, 128], sizes = [8, 32], strides = [1, 1]} : vector<64x384xf32> to vector<8x32xf32>
    %52 = vector.extract_strided_slice %42 {offsets = [0, 128], sizes = [8, 32], strides = [1, 1]} : vector<8x384xf32> to vector<8x32xf32>
    %53 = arith.addf %51, %52 : vector<8x32xf32>
    %54 = arith.negf %53 : vector<8x32xf32>
    %55 = math.exp %54 : vector<8x32xf32>
    %cst_19 = arith.constant 1.000000e+00 : f32
    %56 = vector.broadcast %cst_19 : f32 to vector<8x32xf32>
    %57 = arith.addf %56, %55 : vector<8x32xf32>
    %58 = arith.divf %56, %57 : vector<8x32xf32>
    %59 = vector.extract_strided_slice %9 {offsets = [8, 256], sizes = [8, 32], strides = [1, 1]} : vector<64x384xf32> to vector<8x32xf32>
    %60 = vector.extract_strided_slice %42 {offsets = [0, 256], sizes = [8, 32], strides = [1, 1]} : vector<8x384xf32> to vector<8x32xf32>
    %61 = vector.broadcast %11 : vector<1x32xf32> to vector<8x32xf32>
    %62 = arith.addf %60, %61 : vector<8x32xf32>
    %63 = arith.mulf %50, %62 : vector<8x32xf32>
    %64 = arith.addf %59, %63 : vector<8x32xf32>
    %65 = math.tanh %64 : vector<8x32xf32>
    %cst_20 = arith.constant 1.000000e+00 : f32
    %66 = vector.broadcast %cst_20 : f32 to vector<8x32xf32>
    %67 = arith.subf %66, %58 : vector<8x32xf32>
    %68 = arith.mulf %67, %65 : vector<8x32xf32>
    %69 = arith.mulf %58, %41 : vector<8x32xf32>
    %70 = arith.addf %68, %69 : vector<8x32xf32>
    %cst_21 = arith.constant dense<0.000000e+00> : vector<8x384xf32>
    %71 = tpu.matmul %70, %10, %cst_21 {dimension_numbers = #tpu.dot_dimension_numbers<[1], [0], [0], [1], [0, 0, 1, 1], [], []>} : vector<8x32xf32>, vector<32x384xf32>, vector<8x384xf32> -> vector<8x384xf32>
    %72 = vector.extract_strided_slice %9 {offsets = [16, 0], sizes = [8, 32], strides = [1, 1]} : vector<64x384xf32> to vector<8x32xf32>
    %73 = vector.extract_strided_slice %71 {offsets = [0, 0], sizes = [8, 32], strides = [1, 1]} : vector<8x384xf32> to vector<8x32xf32>
    %74 = arith.addf %72, %73 : vector<8x32xf32>
    %75 = arith.negf %74 : vector<8x32xf32>
    %76 = math.exp %75 : vector<8x32xf32>
    %cst_22 = arith.constant 1.000000e+00 : f32
    %77 = vector.broadcast %cst_22 : f32 to vector<8x32xf32>
    %78 = arith.addf %77, %76 : vector<8x32xf32>
    %79 = arith.divf %77, %78 : vector<8x32xf32>
    %80 = vector.extract_strided_slice %9 {offsets = [16, 128], sizes = [8, 32], strides = [1, 1]} : vector<64x384xf32> to vector<8x32xf32>
    %81 = vector.extract_strided_slice %71 {offsets = [0, 128], sizes = [8, 32], strides = [1, 1]} : vector<8x384xf32> to vector<8x32xf32>
    %82 = arith.addf %80, %81 : vector<8x32xf32>
    %83 = arith.negf %82 : vector<8x32xf32>
    %84 = math.exp %83 : vector<8x32xf32>
    %cst_23 = arith.constant 1.000000e+00 : f32
    %85 = vector.broadcast %cst_23 : f32 to vector<8x32xf32>
    %86 = arith.addf %85, %84 : vector<8x32xf32>
    %87 = arith.divf %85, %86 : vector<8x32xf32>
    %88 = vector.extract_strided_slice %9 {offsets = [16, 256], sizes = [8, 32], strides = [1, 1]} : vector<64x384xf32> to vector<8x32xf32>
    %89 = vector.extract_strided_slice %71 {offsets = [0, 256], sizes = [8, 32], strides = [1, 1]} : vector<8x384xf32> to vector<8x32xf32>
    %90 = vector.broadcast %11 : vector<1x32xf32> to vector<8x32xf32>
    %91 = arith.addf %89, %90 : vector<8x32xf32>
    %92 = arith.mulf %79, %91 : vector<8x32xf32>
    %93 = arith.addf %88, %92 : vector<8x32xf32>
    %94 = math.tanh %93 : vector<8x32xf32>
    %cst_24 = arith.constant 1.000000e+00 : f32
    %95 = vector.broadcast %cst_24 : f32 to vector<8x32xf32>
    %96 = arith.subf %95, %87 : vector<8x32xf32>
    %97 = arith.mulf %96, %94 : vector<8x32xf32>
    %98 = arith.mulf %87, %70 : vector<8x32xf32>
    %99 = arith.addf %97, %98 : vector<8x32xf32>
    %cst_25 = arith.constant dense<0.000000e+00> : vector<8x384xf32>
    %100 = tpu.matmul %99, %10, %cst_25 {dimension_numbers = #tpu.dot_dimension_numbers<[1], [0], [0], [1], [0, 0, 1, 1], [], []>} : vector<8x32xf32>, vector<32x384xf32>, vector<8x384xf32> -> vector<8x384xf32>
    %101 = vector.extract_strided_slice %9 {offsets = [24, 0], sizes = [8, 32], strides = [1, 1]} : vector<64x384xf32> to vector<8x32xf32>
    %102 = vector.extract_strided_slice %100 {offsets = [0, 0], sizes = [8, 32], strides = [1, 1]} : vector<8x384xf32> to vector<8x32xf32>
    %103 = arith.addf %101, %102 : vector<8x32xf32>
    %104 = arith.negf %103 : vector<8x32xf32>
    %105 = math.exp %104 : vector<8x32xf32>
    %cst_26 = arith.constant 1.000000e+00 : f32
    %106 = vector.broadcast %cst_26 : f32 to vector<8x32xf32>
    %107 = arith.addf %106, %105 : vector<8x32xf32>
    %108 = arith.divf %106, %107 : vector<8x32xf32>
    %109 = vector.extract_strided_slice %9 {offsets = [24, 128], sizes = [8, 32], strides = [1, 1]} : vector<64x384xf32> to vector<8x32xf32>
    %110 = vector.extract_strided_slice %100 {offsets = [0, 128], sizes = [8, 32], strides = [1, 1]} : vector<8x384xf32> to vector<8x32xf32>
    %111 = arith.addf %109, %110 : vector<8x32xf32>
    %112 = arith.negf %111 : vector<8x32xf32>
    %113 = math.exp %112 : vector<8x32xf32>
    %cst_27 = arith.constant 1.000000e+00 : f32
    %114 = vector.broadcast %cst_27 : f32 to vector<8x32xf32>
    %115 = arith.addf %114, %113 : vector<8x32xf32>
    %116 = arith.divf %114, %115 : vector<8x32xf32>
    %117 = vector.extract_strided_slice %9 {offsets = [24, 256], sizes = [8, 32], strides = [1, 1]} : vector<64x384xf32> to vector<8x32xf32>
    %118 = vector.extract_strided_slice %100 {offsets = [0, 256], sizes = [8, 32], strides = [1, 1]} : vector<8x384xf32> to vector<8x32xf32>
    %119 = vector.broadcast %11 : vector<1x32xf32> to vector<8x32xf32>
    %120 = arith.addf %118, %119 : vector<8x32xf32>
    %121 = arith.mulf %108, %120 : vector<8x32xf32>
    %122 = arith.addf %117, %121 : vector<8x32xf32>
    %123 = math.tanh %122 : vector<8x32xf32>
    %cst_28 = arith.constant 1.000000e+00 : f32
    %124 = vector.broadcast %cst_28 : f32 to vector<8x32xf32>
    %125 = arith.subf %124, %116 : vector<8x32xf32>
    %126 = arith.mulf %125, %123 : vector<8x32xf32>
    %127 = arith.mulf %116, %99 : vector<8x32xf32>
    %128 = arith.addf %126, %127 : vector<8x32xf32>
    %cst_29 = arith.constant dense<0.000000e+00> : vector<8x384xf32>
    %129 = tpu.matmul %128, %10, %cst_29 {dimension_numbers = #tpu.dot_dimension_numbers<[1], [0], [0], [1], [0, 0, 1, 1], [], []>} : vector<8x32xf32>, vector<32x384xf32>, vector<8x384xf32> -> vector<8x384xf32>
    %130 = vector.extract_strided_slice %9 {offsets = [32, 0], sizes = [8, 32], strides = [1, 1]} : vector<64x384xf32> to vector<8x32xf32>
    %131 = vector.extract_strided_slice %129 {offsets = [0, 0], sizes = [8, 32], strides = [1, 1]} : vector<8x384xf32> to vector<8x32xf32>
    %132 = arith.addf %130, %131 : vector<8x32xf32>
    %133 = arith.negf %132 : vector<8x32xf32>
    %134 = math.exp %133 : vector<8x32xf32>
    %cst_30 = arith.constant 1.000000e+00 : f32
    %135 = vector.broadcast %cst_30 : f32 to vector<8x32xf32>
    %136 = arith.addf %135, %134 : vector<8x32xf32>
    %137 = arith.divf %135, %136 : vector<8x32xf32>
    %138 = vector.extract_strided_slice %9 {offsets = [32, 128], sizes = [8, 32], strides = [1, 1]} : vector<64x384xf32> to vector<8x32xf32>
    %139 = vector.extract_strided_slice %129 {offsets = [0, 128], sizes = [8, 32], strides = [1, 1]} : vector<8x384xf32> to vector<8x32xf32>
    %140 = arith.addf %138, %139 : vector<8x32xf32>
    %141 = arith.negf %140 : vector<8x32xf32>
    %142 = math.exp %141 : vector<8x32xf32>
    %cst_31 = arith.constant 1.000000e+00 : f32
    %143 = vector.broadcast %cst_31 : f32 to vector<8x32xf32>
    %144 = arith.addf %143, %142 : vector<8x32xf32>
    %145 = arith.divf %143, %144 : vector<8x32xf32>
    %146 = vector.extract_strided_slice %9 {offsets = [32, 256], sizes = [8, 32], strides = [1, 1]} : vector<64x384xf32> to vector<8x32xf32>
    %147 = vector.extract_strided_slice %129 {offsets = [0, 256], sizes = [8, 32], strides = [1, 1]} : vector<8x384xf32> to vector<8x32xf32>
    %148 = vector.broadcast %11 : vector<1x32xf32> to vector<8x32xf32>
    %149 = arith.addf %147, %148 : vector<8x32xf32>
    %150 = arith.mulf %137, %149 : vector<8x32xf32>
    %151 = arith.addf %146, %150 : vector<8x32xf32>
    %152 = math.tanh %151 : vector<8x32xf32>
    %cst_32 = arith.constant 1.000000e+00 : f32
    %153 = vector.broadcast %cst_32 : f32 to vector<8x32xf32>
    %154 = arith.subf %153, %145 : vector<8x32xf32>
    %155 = arith.mulf %154, %152 : vector<8x32xf32>
    %156 = arith.mulf %145, %128 : vector<8x32xf32>
    %157 = arith.addf %155, %156 : vector<8x32xf32>
    %cst_33 = arith.constant dense<0.000000e+00> : vector<8x384xf32>
    %158 = tpu.matmul %157, %10, %cst_33 {dimension_numbers = #tpu.dot_dimension_numbers<[1], [0], [0], [1], [0, 0, 1, 1], [], []>} : vector<8x32xf32>, vector<32x384xf32>, vector<8x384xf32> -> vector<8x384xf32>
    %159 = vector.extract_strided_slice %9 {offsets = [40, 0], sizes = [8, 32], strides = [1, 1]} : vector<64x384xf32> to vector<8x32xf32>
    %160 = vector.extract_strided_slice %158 {offsets = [0, 0], sizes = [8, 32], strides = [1, 1]} : vector<8x384xf32> to vector<8x32xf32>
    %161 = arith.addf %159, %160 : vector<8x32xf32>
    %162 = arith.negf %161 : vector<8x32xf32>
    %163 = math.exp %162 : vector<8x32xf32>
    %cst_34 = arith.constant 1.000000e+00 : f32
    %164 = vector.broadcast %cst_34 : f32 to vector<8x32xf32>
    %165 = arith.addf %164, %163 : vector<8x32xf32>
    %166 = arith.divf %164, %165 : vector<8x32xf32>
    %167 = vector.extract_strided_slice %9 {offsets = [40, 128], sizes = [8, 32], strides = [1, 1]} : vector<64x384xf32> to vector<8x32xf32>
    %168 = vector.extract_strided_slice %158 {offsets = [0, 128], sizes = [8, 32], strides = [1, 1]} : vector<8x384xf32> to vector<8x32xf32>
    %169 = arith.addf %167, %168 : vector<8x32xf32>
    %170 = arith.negf %169 : vector<8x32xf32>
    %171 = math.exp %170 : vector<8x32xf32>
    %cst_35 = arith.constant 1.000000e+00 : f32
    %172 = vector.broadcast %cst_35 : f32 to vector<8x32xf32>
    %173 = arith.addf %172, %171 : vector<8x32xf32>
    %174 = arith.divf %172, %173 : vector<8x32xf32>
    %175 = vector.extract_strided_slice %9 {offsets = [40, 256], sizes = [8, 32], strides = [1, 1]} : vector<64x384xf32> to vector<8x32xf32>
    %176 = vector.extract_strided_slice %158 {offsets = [0, 256], sizes = [8, 32], strides = [1, 1]} : vector<8x384xf32> to vector<8x32xf32>
    %177 = vector.broadcast %11 : vector<1x32xf32> to vector<8x32xf32>
    %178 = arith.addf %176, %177 : vector<8x32xf32>
    %179 = arith.mulf %166, %178 : vector<8x32xf32>
    %180 = arith.addf %175, %179 : vector<8x32xf32>
    %181 = math.tanh %180 : vector<8x32xf32>
    %cst_36 = arith.constant 1.000000e+00 : f32
    %182 = vector.broadcast %cst_36 : f32 to vector<8x32xf32>
    %183 = arith.subf %182, %174 : vector<8x32xf32>
    %184 = arith.mulf %183, %181 : vector<8x32xf32>
    %185 = arith.mulf %174, %157 : vector<8x32xf32>
    %186 = arith.addf %184, %185 : vector<8x32xf32>
    %cst_37 = arith.constant dense<0.000000e+00> : vector<8x384xf32>
    %187 = tpu.matmul %186, %10, %cst_37 {dimension_numbers = #tpu.dot_dimension_numbers<[1], [0], [0], [1], [0, 0, 1, 1], [], []>} : vector<8x32xf32>, vector<32x384xf32>, vector<8x384xf32> -> vector<8x384xf32>
    %188 = vector.extract_strided_slice %9 {offsets = [48, 0], sizes = [8, 32], strides = [1, 1]} : vector<64x384xf32> to vector<8x32xf32>
    %189 = vector.extract_strided_slice %187 {offsets = [0, 0], sizes = [8, 32], strides = [1, 1]} : vector<8x384xf32> to vector<8x32xf32>
    %190 = arith.addf %188, %189 : vector<8x32xf32>
    %191 = arith.negf %190 : vector<8x32xf32>
    %192 = math.exp %191 : vector<8x32xf32>
    %cst_38 = arith.constant 1.000000e+00 : f32
    %193 = vector.broadcast %cst_38 : f32 to vector<8x32xf32>
    %194 = arith.addf %193, %192 : vector<8x32xf32>
    %195 = arith.divf %193, %194 : vector<8x32xf32>
    %196 = vector.extract_strided_slice %9 {offsets = [48, 128], sizes = [8, 32], strides = [1, 1]} : vector<64x384xf32> to vector<8x32xf32>
    %197 = vector.extract_strided_slice %187 {offsets = [0, 128], sizes = [8, 32], strides = [1, 1]} : vector<8x384xf32> to vector<8x32xf32>
    %198 = arith.addf %196, %197 : vector<8x32xf32>
    %199 = arith.negf %198 : vector<8x32xf32>
    %200 = math.exp %199 : vector<8x32xf32>
    %cst_39 = arith.constant 1.000000e+00 : f32
    %201 = vector.broadcast %cst_39 : f32 to vector<8x32xf32>
    %202 = arith.addf %201, %200 : vector<8x32xf32>
    %203 = arith.divf %201, %202 : vector<8x32xf32>
    %204 = vector.extract_strided_slice %9 {offsets = [48, 256], sizes = [8, 32], strides = [1, 1]} : vector<64x384xf32> to vector<8x32xf32>
    %205 = vector.extract_strided_slice %187 {offsets = [0, 256], sizes = [8, 32], strides = [1, 1]} : vector<8x384xf32> to vector<8x32xf32>
    %206 = vector.broadcast %11 : vector<1x32xf32> to vector<8x32xf32>
    %207 = arith.addf %205, %206 : vector<8x32xf32>
    %208 = arith.mulf %195, %207 : vector<8x32xf32>
    %209 = arith.addf %204, %208 : vector<8x32xf32>
    %210 = math.tanh %209 : vector<8x32xf32>
    %cst_40 = arith.constant 1.000000e+00 : f32
    %211 = vector.broadcast %cst_40 : f32 to vector<8x32xf32>
    %212 = arith.subf %211, %203 : vector<8x32xf32>
    %213 = arith.mulf %212, %210 : vector<8x32xf32>
    %214 = arith.mulf %203, %186 : vector<8x32xf32>
    %215 = arith.addf %213, %214 : vector<8x32xf32>
    %cst_41 = arith.constant dense<0.000000e+00> : vector<8x384xf32>
    %216 = tpu.matmul %215, %10, %cst_41 {dimension_numbers = #tpu.dot_dimension_numbers<[1], [0], [0], [1], [0, 0, 1, 1], [], []>} : vector<8x32xf32>, vector<32x384xf32>, vector<8x384xf32> -> vector<8x384xf32>
    %217 = vector.extract_strided_slice %9 {offsets = [56, 0], sizes = [8, 32], strides = [1, 1]} : vector<64x384xf32> to vector<8x32xf32>
    %218 = vector.extract_strided_slice %216 {offsets = [0, 0], sizes = [8, 32], strides = [1, 1]} : vector<8x384xf32> to vector<8x32xf32>
    %219 = arith.addf %217, %218 : vector<8x32xf32>
    %220 = arith.negf %219 : vector<8x32xf32>
    %221 = math.exp %220 : vector<8x32xf32>
    %cst_42 = arith.constant 1.000000e+00 : f32
    %222 = vector.broadcast %cst_42 : f32 to vector<8x32xf32>
    %223 = arith.addf %222, %221 : vector<8x32xf32>
    %224 = arith.divf %222, %223 : vector<8x32xf32>
    %225 = vector.extract_strided_slice %9 {offsets = [56, 128], sizes = [8, 32], strides = [1, 1]} : vector<64x384xf32> to vector<8x32xf32>
    %226 = vector.extract_strided_slice %216 {offsets = [0, 128], sizes = [8, 32], strides = [1, 1]} : vector<8x384xf32> to vector<8x32xf32>
    %227 = arith.addf %225, %226 : vector<8x32xf32>
    %228 = arith.negf %227 : vector<8x32xf32>
    %229 = math.exp %228 : vector<8x32xf32>
    %cst_43 = arith.constant 1.000000e+00 : f32
    %230 = vector.broadcast %cst_43 : f32 to vector<8x32xf32>
    %231 = arith.addf %230, %229 : vector<8x32xf32>
    %232 = arith.divf %230, %231 : vector<8x32xf32>
    %233 = vector.extract_strided_slice %9 {offsets = [56, 256], sizes = [8, 32], strides = [1, 1]} : vector<64x384xf32> to vector<8x32xf32>
    %234 = vector.extract_strided_slice %216 {offsets = [0, 256], sizes = [8, 32], strides = [1, 1]} : vector<8x384xf32> to vector<8x32xf32>
    %235 = vector.broadcast %11 : vector<1x32xf32> to vector<8x32xf32>
    %236 = arith.addf %234, %235 : vector<8x32xf32>
    %237 = arith.mulf %224, %236 : vector<8x32xf32>
    %238 = arith.addf %233, %237 : vector<8x32xf32>
    %239 = math.tanh %238 : vector<8x32xf32>
    %cst_44 = arith.constant 1.000000e+00 : f32
    %240 = vector.broadcast %cst_44 : f32 to vector<8x32xf32>
    %241 = arith.subf %240, %232 : vector<8x32xf32>
    %242 = arith.mulf %241, %239 : vector<8x32xf32>
    %243 = arith.mulf %232, %215 : vector<8x32xf32>
    %244 = arith.addf %242, %243 : vector<8x32xf32>
    %c0_45 = arith.constant 0 : index
    %c0_46 = arith.constant 0 : index
    %245 = vector.load %arg5[%c0_45, %c0_46] : memref<40x16xf32, #tpu.memory_space<vmem>>, vector<32x16xf32>
    %cst_47 = arith.constant dense<0.000000e+00> : vector<8x16xf32>
    %246 = tpu.matmul %244, %245, %cst_47 {dimension_numbers = #tpu.dot_dimension_numbers<[1], [0], [0], [1], [0, 0, 1, 1], [], []>} : vector<8x32xf32>, vector<32x16xf32>, vector<8x16xf32> -> vector<8x16xf32>
    %c32 = arith.constant 32 : index
    %c0_48 = arith.constant 0 : index
    %247 = vector.load %arg5[%c32, %c0_48] : memref<40x16xf32, #tpu.memory_space<vmem>>, vector<1x16xf32>
    %248 = vector.broadcast %247 : vector<1x16xf32> to vector<8x16xf32>
    %249 = arith.addf %246, %248 : vector<8x16xf32>
    %cst_49 = arith.constant 0.000000e+00 : f32
    %250 = vector.broadcast %cst_49 : f32 to vector<8x16xf32>
    %c0_50 = arith.constant 0 : index
    %251 = memref.load %arg6[%c0_50] : memref<5xf32, #tpu.memory_space<smem>>
    %252 = vector.extract_strided_slice %4 {offsets = [32, 0], sizes = [8, 16], strides = [1, 1]} : vector<64x16xf32> to vector<8x16xf32>
    %253 = vector.broadcast %251 : f32 to vector<8x16xf32>
    %254 = arith.mulf %253, %252 : vector<8x16xf32>
    %255 = arith.addf %250, %254 : vector<8x16xf32>
    %c1 = arith.constant 1 : index
    %256 = memref.load %arg6[%c1] : memref<5xf32, #tpu.memory_space<smem>>
    %257 = vector.extract_strided_slice %4 {offsets = [40, 0], sizes = [8, 16], strides = [1, 1]} : vector<64x16xf32> to vector<8x16xf32>
    %258 = vector.broadcast %256 : f32 to vector<8x16xf32>
    %259 = arith.mulf %258, %257 : vector<8x16xf32>
    %260 = arith.addf %255, %259 : vector<8x16xf32>
    %c2 = arith.constant 2 : index
    %261 = memref.load %arg6[%c2] : memref<5xf32, #tpu.memory_space<smem>>
    %262 = vector.extract_strided_slice %4 {offsets = [48, 0], sizes = [8, 16], strides = [1, 1]} : vector<64x16xf32> to vector<8x16xf32>
    %263 = vector.broadcast %261 : f32 to vector<8x16xf32>
    %264 = arith.mulf %263, %262 : vector<8x16xf32>
    %265 = arith.addf %260, %264 : vector<8x16xf32>
    %c3 = arith.constant 3 : index
    %266 = memref.load %arg6[%c3] : memref<5xf32, #tpu.memory_space<smem>>
    %267 = vector.extract_strided_slice %4 {offsets = [56, 0], sizes = [8, 16], strides = [1, 1]} : vector<64x16xf32> to vector<8x16xf32>
    %268 = vector.broadcast %266 : f32 to vector<8x16xf32>
    %269 = arith.mulf %268, %267 : vector<8x16xf32>
    %270 = arith.addf %265, %269 : vector<8x16xf32>
    %cst_51 = arith.constant 0.699999988 : f32
    %271 = vector.broadcast %cst_51 : f32 to vector<8x16xf32>
    %272 = arith.mulf %249, %271 : vector<8x16xf32>
    %273 = arith.addf %272, %270 : vector<8x16xf32>
    %c4 = arith.constant 4 : index
    %274 = memref.load %arg6[%c4] : memref<5xf32, #tpu.memory_space<smem>>
    %275 = vector.broadcast %274 : f32 to vector<8x16xf32>
    %276 = arith.addf %273, %275 : vector<8x16xf32>
    %277 = arith.negf %276 : vector<8x16xf32>
    %278 = math.exp %277 : vector<8x16xf32>
    %cst_52 = arith.constant 1.000000e+00 : f32
    %279 = vector.broadcast %cst_52 : f32 to vector<8x16xf32>
    %280 = arith.addf %279, %278 : vector<8x16xf32>
    %281 = arith.divf %279, %280 : vector<8x16xf32>
    %c0_53 = arith.constant 0 : index
    %c0_54 = arith.constant 0 : index
    %282 = vector.load %arg7[%c0_53, %c0_54] : memref<8x16xf32, #tpu.memory_space<vmem>>, vector<8x16xf32>
    tpu.vector_store %arg7[%c0_53, %c0_54], %281 {strides = array<i32>} : memref<8x16xf32, #tpu.memory_space<vmem>>, vector<8x16xf32>,
    return
  }
}

</mosaic_0001>

<bundles_post_ra>
// kernel: tpu_custom_call.1
= control target key start
LH: loop header
LB: loop body
LE: loop exit
PB: predicated region body
PF: predicated region fallthrough
CT: control target
= control target key end

     0   :  { %12 = vsyncpa [#allocation4], 0  ;;  %s2804_s0 = inlined_call_operand.vmem [shape: f32[64,16], index: 0, kind: input, shape index: {}]   ;;  %s2805_s1 = inlined_call_operand.vmem [shape: f32[32,16], index: 1, kind: input, shape index: {}]   ;;  %s2806_s2 = inlined_call_operand.vmem [shape: f32[16,384], index: 2, kind: input, shape index: {}]   ;;  %s2807_s3 = inlined_call_operand.vmem [shape: f32[32,384], index: 3, kind: input, shape index: {}]   ;;  %s2808_s4 = inlined_call_operand.vmem [shape: f32[1,512], index: 4, kind: input, shape index: {}]   ;;  %s2809_s5 = inlined_call_operand.vmem [shape: f32[40,16], index: 5, kind: input, shape index: {}]   ;;  %s2810_s6 = inlined_call_operand.vmem [shape: f32[5], index: 6, kind: input, shape index: {}]   ;;  %s2811_s7 = inlined_call_operand.hbm [shape: f32[8,16], index: 7, kind: output, shape index: {}]  }
   0x1   :  { %13 = vsyncpa [#allocation3], 0  ;;  %s32_s26 = sshll.u32 %s2810_s6, 4  ;;  %s33_s26 = int_to_ptr.vmem [resolvable:$true] %s32_s26 }
   0x2   :  { %s2272_s27 = scalar_lea.vmem %s33_s26, 16  ;;  %p2277_p1 = scmp.lt.s32.totalorder %s33_s26, %s33_s26 }
   0x3   :  { %p2273_p0 = scmp.ne.s32.totalorder %s33_s26, %s2272_s27  ;;  %p2278_p2 = scmp.lt.s32.totalorder %s2272_s27, %s2272_s27 }
   0x5   :  { %p2279_p3 = por %p2278_p2, %p2277_p1 }
   0x7   :  { %p2280_p4 = pnand %p2279_p3, %p2273_p0 }
   0x9   :  { %2283 = shalt.err (!%p2280_p4)
}
   0xa   :  { %s2308_s28 = smov [#allocation2]  }
   0xb   :  { %35 = dma.vmem_to_smem %s33_s26, 16, %s2308_s28, [#allocation4]  }
   0xc   :  { %2304 = dma.done.wait [#allocation4], 16  }
   0xd   :  { %2305 = vsyncadd [#allocation4], 4294967280 }
   0xe   :  { %39 = sfence }
   0xf   :  { %v41_v0 = vld [vmem:[%s2805_s1 + $0x8] sm:$0xff]  ;;  %v43_v1 = vld [vmem:[%s2805_s1 + $0x18] sm:$0xff]  ;;  %v40_v2 = vld [vmem:[%s2805_s1] sm:$0xff]  ;;  %vm54_vm0 = vcmask 130048   ;;  %v2309_v20 = vmov 0.0   ;;  %s2425_s17 = sld [smem:[#allocation2 + $0x1]]  ;;  %v192_v52 = vlaneseq }
  0x10   :  { %v45_v3 = vmul.f32 %v43_v1, %v41_v0  ;;  %v42_v4 = vld [vmem:[%s2805_s1 + $0x10] sm:$0xff]  ;;  %v46_v5 = vld [vmem:[%s2804_s0] sm:$0xff]  ;;  %v47_v7 = vld [vmem:[%s2804_s0 + $0x8] sm:$0xff]  ;;  %s2427_s18 = sld [smem:[#allocation2]]  ;;  %vm2310_vm1 = vmmov 0   ;;  %vm462_vm2 = vcmask 261120  }
  0x11   :  { %v44_v6 = vmul.f32 %v42_v4, %v40_v2  ;;  %2053 = vmatprep.mubr.msk.f32.mxu0 %vm54_vm0, %v46_v5  ;;  %v52_v8 = vld [vmem:[%s2804_s0 + $0x30] sm:$0xff]  ;;  %v53_v10 = vld [vmem:[%s2804_s0 + $0x38] sm:$0xff]  ;;  %v189_v11 = vld [vmem:[%s2806_s2 + $0x28] sm:$0xff]  ;;  %s2429_s1 = sld [smem:[#allocation2 + $0x2]]  ;;  %v193_v53 = vshrl.u32 %v192_v52, 7  ;;  %s2311_s27 = smov [#allocation5]  }
  0x12   :  { %2049 = vmatprep.subr.mxu0 %v45_v3  ;;  %2180 = vmatprep.subr.mxu1 %v45_v3  ;;  %v48_v9 = vld [vmem:[%s2804_s0 + $0x10] sm:$0xff]  ;;  %v188_v12 = vld [vmem:[%s2806_s2 + $0x20] sm:$0xff]  ;;  %v49_v13 = vld [vmem:[%s2804_s0 + $0x18] sm:$0xff]  ;;  %s2452_s24 = sld [smem:[#allocation2 + $0x3]]  ;;  %s1913_s28 = sshll.u32 %s2311_s27, 4  ;;  %s1914_s28 = int_to_ptr.vmem [resolvable:$true] %s1913_s28 }
  0x13   :  { %2050 = vmatpush3.msra.mxu0 %v45_v3  ;;  %2182 = vmatpush3.msra.mxu1 %v45_v3  ;;  %v186_v14 = vld [vmem:[%s2806_s2 + $0x10] sm:$0xff]  ;;  %v50_v15 = vld [vmem:[%s2804_s0 + $0x20] sm:$0xff]  ;;  %v51_v16 = vld [vmem:[%s2804_s0 + $0x28] sm:$0xff]  ;;  %v202_v54 = vsub.s32 2, %v193_v53  ;;  %v194_v57 = vsub.s32 0, %v193_v53  ;;  %v198_v60 = vsub.s32 1, %v193_v53  ;;  %p2289_p6 = scmp.lt.s32.totalorder %s1914_s28, %s1914_s28 }
  0x14   :  { %2051 = vmatprep.subr.mxu0 %v44_v6  ;;  %2181 = vmatprep.subr.mxu1 %v44_v6  ;;  %v187_v17 = vld [vmem:[%s2806_s2 + $0x18] sm:$0xff]  ;;  %v185_v18 = vld [vmem:[%s2806_s2 + $0x8] sm:$0xff]  ;;  %v184_v19 = vld [vmem:[%s2806_s2] sm:$0xff] }
  0x15   :  { %2052 = vmatpush3.msra.mxu0 %v44_v6  ;;  %2183 = vmatpush3.msra.mxu1 %v44_v6  ;;  %v2421_v21 = vld [vmem:[%s2807_s3 + $0x50] sm:$0xff]  ;;  %v2434_v24 = vld [vmem:[%s2807_s3 + $0x48] sm:$0xff]  ;;  %v2439_v25 = vld [vmem:[%s2807_s3 + $0x58] sm:$0xff]  ;;  %v1884_v34 = vstv %s2425_s17 }
  0x16   :  { %2054 = vmatmul.mubr.msk.f32.vlgmr.msra.gmra.mxu0 %vm54_vm0, %v47_v7  ;;  %2062 = vmatprep.mubr.msk.f32.mxu1 %vm54_vm0, %v52_v8  ;;  %v2446_v26 = vld [vmem:[%s2807_s3 + $0x38] sm:$0xff]  ;;  %v2460_v30 = vld [vmem:[%s2807_s3 + $0x30] sm:$0xff]  ;;  %v2466_v31 = vld [vmem:[%s2807_s3 + $0x40] sm:$0xff]  ;;  %v1880_v35 = vstv %s2427_s18 }
  0x17   :  { %2056 = vmatprep.mubr.msk.f32.mxu0 %vm54_vm0, %v48_v9  ;;  %2063 = vmatmul.mubr.msk.f32.vlgmr.msra.gmra.mxu1 %vm54_vm0, %v53_v10  ;;  %v2473_v32 = vld [vmem:[%s2807_s3 + $0x20] sm:$0xff]  ;;  %v1888_v37 = vstv %s2429_s1  ;;  %v2486_v39 = vld [vmem:[%s2807_s3 + $0x18] sm:$0xff]  ;;  %v2494_v43 = vld [vmem:[%s2807_s3 + $0x8] sm:$0xff] }
  0x18   :  { %2065 = vmatprep.subr.mxu0 %v189_v11  ;;  %259 = vmatprep.subr.mxu1 %v188_v12  ;;  %v2499_v44 = vld [vmem:[%s2807_s3 + $0x28] sm:$0xff]  ;;  %v1892_v45 = vstv %s2452_s24  ;;  %v2507_v46 = vld [vmem:[%s2807_s3] sm:$0xff]  ;;  %v2519_v50 = vld [vmem:[%s2807_s3 + $0x10] sm:$0xff]  ;;  %s1982_s24 = sld [smem:[#allocation2 + $0x4]] }
  0x19   :  { %2066 = vmatpush3.msra.mxu0 %v189_v11  ;;  %260 = vmatpush1.msra.mxu1 %v187_v17  ;;  %v190_v55 = vld [vmem:[%s2808_s4] sm:$0x7] }
  0x1a   :  { %2057 = vmatmul.mubr.msk.f32.gmra.mxu0 %vm54_vm0, %v49_v13  ;;  %2067 = vmatprep.subr.mxu0 %v186_v14  ;;  %v2565_v56 = vrot.slane %v190_v55, %v202_v54  ;;  %v195_v63 = vrot.slane %v190_v55, %v194_v57  ;;  %v199_v2 = vrot.slane %v190_v55, %v198_v60 }
  0x1b   :  { %2059 = vmatprep.mubr.msk.f32.mxu0 %vm54_vm0, %v50_v15  ;;  %2068 = vmatpush3.msra.mxu0 %v186_v14 }
  0x1c   :  { %261 = vmatprep.subr.mxu1 %v185_v18  ;;  %295 = vmatprep.mubr.f32.mxu1 %v2309_v20 }
  0x1d   :  { %262 = vmatpush1.msra.mxu1 %v184_v19  ;;  %490 = vmatprep.subr.mxu0 %v2421_v21 }
  0x1e   :  { %2060 = vmatmul.mubr.msk.f32.gmra.mxu0 %vm54_vm0, %v51_v16  ;;  %2081 = vmatprep.subr.mxu1 %v2309_v20 }
  0xd6   :  { %v2055_v22 = vpop.f32.mrf.mxu0 }
  0xd7   :  { %v2450_v28 = vpop.f32.mrf.mxu1 }
  0xd8   :  { %v145_v23 = vpop.f32.mrf.mxu0  ;;  %v1893_v48 = vmul.f32 %v2450_v28, %v1892_v45 }
  0xd9   :  { %1930 = vmatmul.mubr.msk.f32.vlgmr.msra.gmra.mxu1 %vm54_vm0, %v145_v23  ;;  %2069 = vmatprep.mubr.msk.f32.mxu0 %vm54_vm0, %v145_v23  ;;  %v175_v36 = vpop.f32.mrf.mxu1 }
  0xda   :  { %v2058_v27 = vpop.f32.mrf.mxu0  ;;  %2070 = vmatmul.mubr.msk.f32.vlgmr.msra.gmra.mxu0 %vm54_vm0, %v2055_v22  ;;  %301 = vmatprep.mubr.f32.mxu1 %v2309_v20  ;;  %v1889_v42 = vmul.f32 %v1888_v37, %v175_v36 }
  0xdb   :  { %491 = vmatpush1.msra.mxu0 %v2434_v24  ;;  %2082 = vmatpush3.msra.mxu1 %v2439_v25 }
  0xdc   :  { %v155_v29 = vpop.f32.mrf.mxu0  ;;  %492 = vmatprep.subr.mxu0 %v2446_v26  ;;  %2083 = vmatprep.subr.mxu1 %v2309_v20 }
  0xdd   :  { %1931 = vmatmul.mubr.msk.f32.gmra.mxu1 %vm54_vm0, %v2055_v22  ;;  %2072 = vmatprep.mubr.msk.f32.mxu0 %vm54_vm0, %v155_v29 }
  0xde   :  { %v2061_v33 = vpop.f32.mrf.mxu0  ;;  %2073 = vmatmul.mubr.msk.f32.gmra.mxu0 %vm54_vm0, %v2058_v27  ;;  %307 = vmatprep.mubr.f32.mxu1 %v2309_v20 }
  0xdf   :  { %493 = vmatpush1.msra.mxu0 %v2460_v30  ;;  %2084 = vmatpush3.msra.mxu1 %v2466_v31  ;;  %v1885_v40 = vmul.f32 %v2061_v33, %v1884_v34 }
  0xe0   :  { %v165_v38 = vpop.f32.mrf.mxu0  ;;  %494 = vmatprep.subr.mxu0 %v2473_v32  ;;  %2085 = vmatprep.subr.mxu1 %v2309_v20 }
  0xe1   :  { %v1881_v41 = vmul.f32 %v1880_v35, %v165_v38  ;;  %1932 = vmatmul.mubr.msk.f32.gmra.mxu1 %vm54_vm0, %v155_v29  ;;  %2075 = vmatprep.mubr.msk.f32.mxu0 %vm54_vm0, %v165_v38 }
  0xe2   :  { %2076 = vmatmul.mubr.msk.f32.gmra.mxu0 %vm54_vm0, %v2061_v33  ;;  %313 = vmatprep.mubr.f32.mxu1 %v2309_v20 }
  0xe3   :  { %v1886_v47 = vadd.f32 %v1885_v40, %v1881_v41  ;;  %495 = vmatpush1.msra.mxu0 %v2486_v39  ;;  %2078 = vmatprep.mubr.msk.f32.mxu0 %vm54_vm0, %v175_v36 }
  0xe4   :  { %496 = vmatprep.subr.mxu0 %v2494_v43  ;;  %2086 = vmatpush3.msra.mxu1 %v2499_v44 }
  0xe5   :  { %v1890_v49 = vadd.f32 %v1889_v42, %v1886_v47  ;;  %1933 = vmatmul.mubr.msk.f32.gmra.mxu1 %vm54_vm0, %v2058_v27  ;;  %497 = vmatpush1.msra.mxu0 %v2507_v46 }
  0xe6   :  { %2079 = vmatmul.mubr.msk.f32.gmra.mxu0 %vm54_vm0, %v2450_v28  ;;  %319 = vmatprep.mubr.f32.mxu1 %v2309_v20 }
  0xe7   :  { %530 = vmatprep.mubr.f32.mxu0 %v2309_v20  ;;  %2087 = vmatprep.subr.mxu1 %v2309_v20  ;;  %v2526_v51 = vadd.f32 %v1893_v48, %v1890_v49 }
  0xe8   :  { %2088 = vmatpush3.msra.mxu1 %v2519_v50  ;;  %662 = vmatprep.subr.mxu0 %v2421_v21 }
  0xe9   :  { %1934 = vmatmul.mubr.msk.f32.gmra.mxu1 %vm54_vm0, %v165_v38  ;;  %2092 = vmatprep.subr.mxu1 %v2309_v20 }
  0xea   :  { %531 = vmatmul.mubr.f32.vlgmr.msra.gmra.mxu0 %v2309_v20  ;;  %325 = vmatprep.mubr.f32.mxu1 %v2309_v20 }
  0xeb   :  { %663 = vmatpush1.msra.mxu0 %v2434_v24  ;;  %702 = vmatprep.mubr.f32.mxu0 %v2309_v20 }
  0xec   :  { %664 = vmatprep.subr.mxu0 %v2446_v26 }
  0xed   :  { %1935 = vmatmul.mubr.msk.f32.gmra.mxu1 %vm54_vm0, %v2061_v33  ;;  %665 = vmatpush1.msra.mxu0 %v2460_v30 }
  0xee   :  { %331 = vmatprep.mubr.f32.mxu1 %v2309_v20  ;;  %666 = vmatprep.subr.mxu0 %v2473_v32 }
  0xef   :  { %667 = vmatpush1.msra.mxu0 %v2486_v39 }
  0xf0   :  { %668 = vmatprep.subr.mxu0 %v2494_v43 }
  0xf1   :  { %1936 = vmatmul.mubr.msk.f32.gmra.mxu1 %vm54_vm0, %v175_v36  ;;  %669 = vmatpush1.msra.mxu0 %v2507_v46 }
  0xf2   :  { %337 = vmatprep.mubr.f32.mxu1 %v2309_v20  ;;  %828 = vmatprep.subr.mxu0 %v2421_v21 }
  0xf5   :  { %1937 = vmatmul.mubr.msk.f32.gmra.mxu1 %vm54_vm0, %v2450_v28 }
  0xf6   :  { %2089 = vmatprep.mubr.msk.f32.mxu1 %vm2310_vm1, %v2309_v20 }
  0xf9   :  { %2090 = vmatmul.mubr.f32.vlgmr.msra.gmra.mxu1 %v2309_v20 }
  0xfa   :  { %2093 = vmatpush3.msra.mxu1 %v2439_v25  ;;  %2100 = vmatprep.mubr.msk.f32.mxu1 %vm2310_vm1, %v2309_v20 }
  0xfb   :  { %2094 = vmatprep.subr.mxu1 %v2309_v20 }
  0xfc   :  { %2095 = vmatpush3.msra.mxu1 %v2466_v31 }
  0xfd   :  { %2096 = vmatprep.subr.mxu1 %v2309_v20 }
  0xfe   :  { %2097 = vmatpush3.msra.mxu1 %v2499_v44 }
  0xff   :  { %2098 = vmatprep.subr.mxu1 %v2309_v20 }
 0x100   :  { %2099 = vmatpush3.msra.mxu1 %v2519_v50 }
 0x101   :  { %2103 = vmatprep.subr.mxu1 %v2309_v20 }
 0x199   :  { %v297_v58 = vpop.f32.mrf.mxu1 }
 0x19a   :  { %v2071_v59 = vpop.f32.mrf.mxu0  ;;  %v298_v33 = vadd.f32 %v297_v58, %v195_v63 }
 0x19b   :  { %v2568_v61 = vadd.f32 %v2071_v59, %v2565_v56  ;;  %v299_v62 = vpop.f32.mrf.mxu1 }
 0x19c   :  { %v410_v0 = vpop.f32.mrf.mxu0  ;;  %v300_v49 = vadd.f32 %v299_v62, %v199_v2 }
 0x19d   :  { %v303_v1 = vpop.f32.mrf.mxu1 }
 0x19e   :  { %v2570_v3 = vadd.f32 %v303_v1, %v195_v63  ;;  %v2074_v4 = vpop.f32.mrf.mxu0 }
 0x19f   :  { %v2573_v5 = vadd.f32 %v2074_v4, %v2565_v56  ;;  %v305_v6 = vpop.f32.mrf.mxu1 }
 0x1a0   :  { %v2575_v7 = vadd.f32 %v305_v6, %v199_v2  ;;  %v420_v8 = vpop.f32.mrf.mxu0 }
 0x1a1   :  { %v2578_v9 = vadd.f32 %v420_v8, %v2565_v56  ;;  %v309_v10 = vpop.f32.mrf.mxu1 }
 0x1a2   :  { %v2580_v11 = vadd.f32 %v309_v10, %v195_v63  ;;  %v2077_v12 = vpop.f32.mrf.mxu0 }
 0x1a3   :  { %v2583_v13 = vadd.f32 %v2077_v12, %v2565_v56  ;;  %v311_v14 = vpop.f32.mrf.mxu1 }
 0x1a4   :  { %v2585_v15 = vadd.f32 %v311_v14, %v199_v2  ;;  %v430_v16 = vpop.f32.mrf.mxu0 }
 0x1a5   :  { %v2588_v17 = vadd.f32 %v430_v16, %v2565_v56  ;;  %v315_v18 = vpop.f32.mrf.mxu1 }
 0x1a6   :  { %v2590_v19 = vadd.f32 %v315_v18, %v195_v63  ;;  %v2080_v22 = vpop.f32.mrf.mxu0  ;;  %v2619_v18 = vld [vmem:[%s2808_s4 + $0x3] ss:$0 sm:$0xff] }
 0x1a7   :  { %v2593_v23 = vadd.f32 %v2080_v22, %v2565_v56  ;;  %v317_v27 = vpop.f32.mrf.mxu1 }
 0x1a8   :  { %v2595_v28 = vadd.f32 %v317_v27, %v199_v2  ;;  %v440_v29 = vpop.f32.mrf.mxu0 }
 0x1a9   :  { %v2598_v34 = vadd.f32 %v440_v29, %v2565_v56  ;;  %v321_v35 = vpop.f32.mrf.mxu1  ;;  %v411_v29 = vadd.f32 %v410_v0, %v2565_v56 }
 0x1aa   :  { %v2600_v36 = vadd.f32 %v321_v35, %v195_v63  ;;  %v532_v37 = vpop.f32.mrf.mxu0 }
 0x1ab   :  { %v607_v38 = vadd.f32 %v532_v37, %v298_v33  ;;  %v323_v40 = vpop.f32.mrf.mxu1 }
 0x1ac   :  { %v2602_v41 = vadd.f32 %v323_v40, %v199_v2  ;;  %v534_v47 = vpop.f32.mrf.mxu0 }
 0x1ad   :  { %v1946_v42 = vmul.f32 -1.442695, %v607_v38  ;;  %v327_v45 = vpop.f32.mrf.mxu1  ;;  %v614_v54 = vadd.f32 %v534_v47, %v300_v49 }
 0x1ae   :  { %v2604_v48 = vadd.f32 %v327_v45, %v195_v63 }
 0x1af   :  { %2188 = vpow2.f32 %v1946_v42  ;;  %v329_v52 = vpop.f32.mrf.mxu1  ;;  %v1947_v60 = vmul.f32 -1.442695, %v614_v54 }
 0x1b0   :  { %v2606_v53 = vadd.f32 %v329_v52, %v199_v2 }
 0x1b1   :  { %v333_v55 = vpop.f32.mrf.mxu1  ;;  %2190 = vpow2.f32 %v1947_v60 }
 0x1b2   :  { %v2608_v57 = vadd.f32 %v333_v55, %v195_v63 }
 0x1b3   :  { %v335_v58 = vpop.f32.mrf.mxu1 }
 0x1b4   :  { %v2610_v59 = vadd.f32 %v335_v58, %v199_v2 }
 0x1b5   :  { %v339_v1 = vpop.f32.mrf.mxu1 }
 0x1b6   :  { %v2612_v4 = vadd.f32 %v339_v1, %v195_v63 }
 0x1b7   :  { %v341_v6 = vpop.f32.mrf.mxu1 }
 0x1b8   :  { %v2614_v8 = vadd.f32 %v341_v6, %v199_v2 }
 0x1b9   :  { %v603_v62 = vpop.f32.mrf.mxu1 }
 0x1ba   :  { %v627_v27 = vadd.f32 %v2619_v18, %v603_v62 }
 0x1bb   :  { %v2091_v10 = vpop.f32.mrf.mxu1 }
 0x1bc   :  { %v2189_v12 = vpop.eup %2188 }
 0x1bd   :  { %v611_v14 = vadd.f32 1.0, %v2189_v12 }
 0x1be   :  { %v2191_v16 = vpop.eup %2190 }
 0x1bf   :  { %2192 = vrcp.f32 %v611_v14  ;;  %v618_v22 = vadd.f32 1.0, %v2191_v16 }
 0x1c1   :  { %2194 = vrcp.f32 %v618_v22 }
 0x1cc   :  { %v2193_v63 = vpop.eup %2192 }
 0x1cd   :  { %v628_v2 = vmul.f32 %v2193_v63, %v627_v27 }
 0x1ce   :  { %v2195_v35 = vpop.eup %2194 }
 0x1cf   :  { %v629_v33 = vadd.f32 %v628_v2, %v411_v29  ;;  %v631_v37 = vsub.f32 1.0, %v2195_v35  ;;  %v633_v42 = vmul.f32 0.0, %v2195_v35 }
 0x1d1   :  { %2196 = vtanh.f32 %v629_v33 }
 0x1de   :  { %v2197_v38 = vpop.eup %2196 }
 0x1df   :  { %v632_v40 = vmul.f32 %v2197_v38, %v631_v37 }
 0x1e1   :  { %v634_v45 = vadd.f32 %v633_v42, %v632_v40 }
 0x1e3   :  { %1949 = vmatmul.mubr.msk.f32.vlgmr.msra.gmra.mxu0 %vm462_vm2, %v634_v45  ;;  %2101 = vmatmul.mubr.msk.f32.vlgmr.msra.gmra.mxu1 %vm462_vm2, %v634_v45 }
 0x1e4   :  { %829 = vmatpush1.msra.mxu0 %v2434_v24  ;;  %2104 = vmatpush3.msra.mxu1 %v2439_v25 }
 0x1e5   :  { %830 = vmatprep.subr.mxu0 %v2446_v26  ;;  %2105 = vmatprep.subr.mxu1 %v2309_v20 }
 0x1e6   :  { %831 = vmatpush1.msra.mxu0 %v2460_v30  ;;  %2106 = vmatpush3.msra.mxu1 %v2466_v31 }
 0x1e7   :  { %832 = vmatprep.subr.mxu0 %v2473_v32  ;;  %2107 = vmatprep.subr.mxu1 %v2309_v20 }
 0x1e8   :  { %833 = vmatpush1.msra.mxu0 %v2486_v39  ;;  %2108 = vmatpush3.msra.mxu1 %v2499_v44 }
 0x1e9   :  { %834 = vmatprep.subr.mxu0 %v2494_v43  ;;  %2109 = vmatprep.subr.mxu1 %v2309_v20 }
 0x1ea   :  { %835 = vmatpush1.msra.mxu0 %v2507_v46  ;;  %868 = vmatprep.mubr.f32.mxu0 %v2309_v20 }
 0x1eb   :  { %2110 = vmatpush3.msra.mxu1 %v2519_v50  ;;  %2111 = vmatprep.mubr.msk.f32.mxu1 %vm2310_vm1, %v2309_v20 }
 0x1ec   :  { %994 = vmatprep.subr.mxu0 %v2421_v21  ;;  %2114 = vmatprep.subr.mxu1 %v2309_v20 }
 0x2a3   :  { %v704_v56 = vpop.f32.mrf.mxu0  ;;  %v775_v0 = vpop.f32.mrf.mxu1 }
 0x2a4   :  { %v779_v47 = vadd.f32 %v704_v56, %v2570_v3  ;;  %v793_v10 = vadd.f32 %v2619_v18, %v775_v0 }
 0x2a5   :  { %v2102_v49 = vpop.f32.mrf.mxu1  ;;  %v706_v54 = vpop.f32.mrf.mxu0 }
 0x2a6   :  { %v1951_v52 = vmul.f32 -1.442695, %v779_v47  ;;  %v786_v55 = vadd.f32 %v706_v54, %v2575_v7 }
 0x2a8   :  { %2198 = vpow2.f32 %v1951_v52  ;;  %v1952_v58 = vmul.f32 -1.442695, %v786_v55 }
 0x2aa   :  { %2200 = vpow2.f32 %v1952_v58 }
 0x2b5   :  { %v2199_v60 = vpop.eup %2198 }
 0x2b6   :  { %v783_v1 = vadd.f32 1.0, %v2199_v60 }
 0x2b7   :  { %v2201_v6 = vpop.eup %2200 }
 0x2b8   :  { %2202 = vrcp.f32 %v783_v1  ;;  %v790_v62 = vadd.f32 1.0, %v2201_v6 }
 0x2ba   :  { %2204 = vrcp.f32 %v790_v62 }
 0x2c5   :  { %v2203_v12 = vpop.eup %2202 }
 0x2c6   :  { %v794_v14 = vmul.f32 %v2203_v12, %v793_v10 }
 0x2c7   :  { %v2205_v16 = vpop.eup %2204 }
 0x2c8   :  { %v795_v3 = vadd.f32 %v794_v14, %v2568_v61  ;;  %v797_v22 = vsub.f32 1.0, %v2205_v16  ;;  %v799_v7 = vmul.f32 %v2205_v16, %v634_v45 }
 0x2ca   :  { %2206 = vtanh.f32 %v795_v3 }
 0x2d7   :  { %v2207_v27 = vpop.eup %2206 }
 0x2d8   :  { %v798_v63 = vmul.f32 %v2207_v27, %v797_v22 }
 0x2da   :  { %v800_v29 = vadd.f32 %v799_v7, %v798_v63 }
 0x2dc   :  { %1953 = vmatmul.mubr.msk.f32.vlgmr.msra.gmra.mxu0 %vm462_vm2, %v800_v29  ;;  %2112 = vmatmul.mubr.msk.f32.vlgmr.msra.gmra.mxu1 %vm462_vm2, %v800_v29 }
 0x2dd   :  { %995 = vmatpush1.msra.mxu0 %v2434_v24  ;;  %2115 = vmatpush3.msra.mxu1 %v2439_v25 }
 0x2de   :  { %996 = vmatprep.subr.mxu0 %v2446_v26  ;;  %2116 = vmatprep.subr.mxu1 %v2309_v20 }
 0x2df   :  { %997 = vmatpush1.msra.mxu0 %v2460_v30  ;;  %2117 = vmatpush3.msra.mxu1 %v2466_v31 }
 0x2e0   :  { %998 = vmatprep.subr.mxu0 %v2473_v32  ;;  %2118 = vmatprep.subr.mxu1 %v2309_v20 }
 0x2e1   :  { %999 = vmatpush1.msra.mxu0 %v2486_v39  ;;  %2119 = vmatpush3.msra.mxu1 %v2499_v44 }
 0x2e2   :  { %1000 = vmatprep.subr.mxu0 %v2494_v43  ;;  %2120 = vmatprep.subr.mxu1 %v2309_v20 }
 0x2e3   :  { %1001 = vmatpush1.msra.mxu0 %v2507_v46  ;;  %1034 = vmatprep.mubr.f32.mxu0 %v2309_v20 }
 0x2e4   :  { %2121 = vmatpush3.msra.mxu1 %v2519_v50  ;;  %2122 = vmatprep.mubr.msk.f32.mxu1 %vm2310_vm1, %v2309_v20 }
 0x2e5   :  { %1160 = vmatprep.subr.mxu0 %v2421_v21  ;;  %2125 = vmatprep.subr.mxu1 %v2309_v20 }
 0x39c   :  { %v870_v61 = vpop.f32.mrf.mxu0  ;;  %v941_v2 = vpop.f32.mrf.mxu1 }
 0x39d   :  { %v945_v33 = vadd.f32 %v870_v61, %v2580_v11  ;;  %v959_v49 = vadd.f32 %v2619_v18, %v941_v2 }
 0x39e   :  { %v2113_v35 = vpop.f32.mrf.mxu1  ;;  %v872_v38 = vpop.f32.mrf.mxu0 }
 0x39f   :  { %v1955_v37 = vmul.f32 -1.442695, %v945_v33  ;;  %v952_v40 = vadd.f32 %v872_v38, %v2585_v15 }
 0x3a1   :  { %2208 = vpow2.f32 %v1955_v37  ;;  %v1956_v42 = vmul.f32 -1.442695, %v952_v40 }
 0x3a3   :  { %2210 = vpow2.f32 %v1956_v42 }
 0x3ae   :  { %v2209_v45 = vpop.eup %2208 }
 0x3af   :  { %v949_v56 = vadd.f32 1.0, %v2209_v45 }
 0x3b0   :  { %v2211_v0 = vpop.eup %2210 }
 0x3b1   :  { %2212 = vrcp.f32 %v949_v56  ;;  %v956_v47 = vadd.f32 1.0, %v2211_v0 }
 0x3b3   :  { %2214 = vrcp.f32 %v956_v47 }
 0x3be   :  { %v2213_v52 = vpop.eup %2212 }
 0x3bf   :  { %v960_v54 = vmul.f32 %v2213_v52, %v959_v49 }
 0x3c0   :  { %v2215_v55 = vpop.eup %2214 }
 0x3c1   :  { %v961_v11 = vadd.f32 %v960_v54, %v2578_v9  ;;  %v963_v58 = vsub.f32 1.0, %v2215_v55  ;;  %v965_v15 = vmul.f32 %v2215_v55, %v800_v29 }
 0x3c3   :  { %2216 = vtanh.f32 %v961_v11 }
 0x3d0   :  { %v2217_v60 = vpop.eup %2216 }
 0x3d1   :  { %v964_v1 = vmul.f32 %v2217_v60, %v963_v58 }
 0x3d3   :  { %v966_v6 = vadd.f32 %v965_v15, %v964_v1 }
 0x3d5   :  { %1957 = vmatmul.mubr.msk.f32.vlgmr.msra.gmra.mxu0 %vm462_vm2, %v966_v6  ;;  %2123 = vmatmul.mubr.msk.f32.vlgmr.msra.gmra.mxu1 %vm462_vm2, %v966_v6 }
 0x3d6   :  { %1161 = vmatpush1.msra.mxu0 %v2434_v24  ;;  %2126 = vmatpush3.msra.mxu1 %v2439_v25 }
 0x3d7   :  { %1162 = vmatprep.subr.mxu0 %v2446_v26  ;;  %2127 = vmatprep.subr.mxu1 %v2309_v20 }
 0x3d8   :  { %1163 = vmatpush1.msra.mxu0 %v2460_v30  ;;  %2128 = vmatpush3.msra.mxu1 %v2466_v31 }
 0x3d9   :  { %1164 = vmatprep.subr.mxu0 %v2473_v32  ;;  %2129 = vmatprep.subr.mxu1 %v2309_v20 }
 0x3da   :  { %1165 = vmatpush1.msra.mxu0 %v2486_v39  ;;  %2130 = vmatpush3.msra.mxu1 %v2499_v44 }
 0x3db   :  { %1166 = vmatprep.subr.mxu0 %v2494_v43  ;;  %2131 = vmatprep.subr.mxu1 %v2309_v20 }
 0x3dc   :  { %1167 = vmatpush1.msra.mxu0 %v2507_v46  ;;  %1200 = vmatprep.mubr.f32.mxu0 %v2309_v20 }
 0x3dd   :  { %2132 = vmatpush3.msra.mxu1 %v2519_v50  ;;  %2133 = vmatprep.mubr.msk.f32.mxu1 %vm2310_vm1, %v2309_v20 }
 0x3de   :  { %1326 = vmatprep.subr.mxu0 %v2421_v21  ;;  %2136 = vmatprep.subr.mxu1 %v2309_v20 }
 0x495   :  { %v1036_v9 = vpop.f32.mrf.mxu0  ;;  %v1107_v62 = vpop.f32.mrf.mxu1 }
 0x496   :  { %v1111_v10 = vadd.f32 %v1036_v9, %v2590_v19  ;;  %v1125_v61 = vadd.f32 %v2619_v18, %v1107_v62 }
 0x497   :  { %v2124_v12 = vpop.f32.mrf.mxu1  ;;  %v1038_v3 = vpop.f32.mrf.mxu0 }
 0x498   :  { %v1959_v14 = vmul.f32 -1.442695, %v1111_v10  ;;  %v1118_v16 = vadd.f32 %v1038_v3, %v2595_v28 }
 0x49a   :  { %2218 = vpow2.f32 %v1959_v14  ;;  %v1960_v22 = vmul.f32 -1.442695, %v1118_v16 }
 0x49c   :  { %2220 = vpow2.f32 %v1960_v22 }
 0x4a7   :  { %v2219_v27 = vpop.eup %2218 }
 0x4a8   :  { %v1115_v63 = vadd.f32 1.0, %v2219_v27 }
 0x4a9   :  { %v2221_v7 = vpop.eup %2220 }
 0x4aa   :  { %2222 = vrcp.f32 %v1115_v63  ;;  %v1122_v29 = vadd.f32 1.0, %v2221_v7 }
 0x4ac   :  { %2224 = vrcp.f32 %v1122_v29 }
 0x4b7   :  { %v2223_v2 = vpop.eup %2222 }
 0x4b8   :  { %v1126_v33 = vmul.f32 %v2223_v2, %v1125_v61 }
 0x4b9   :  { %v2225_v35 = vpop.eup %2224 }
 0x4ba   :  { %v1127_v19 = vadd.f32 %v1126_v33, %v2573_v5  ;;  %v1129_v37 = vsub.f32 1.0, %v2225_v35  ;;  %v1131_v28 = vmul.f32 %v2225_v35, %v966_v6 }
 0x4bc   :  { %2226 = vtanh.f32 %v1127_v19 }
 0x4c9   :  { %v2227_v38 = vpop.eup %2226 }
 0x4ca   :  { %v1130_v40 = vmul.f32 %v2227_v38, %v1129_v37 }
 0x4cc   :  { %v1132_v42 = vadd.f32 %v1131_v28, %v1130_v40 }
 0x4ce   :  { %1961 = vmatmul.mubr.msk.f32.vlgmr.msra.gmra.mxu0 %vm462_vm2, %v1132_v42  ;;  %2134 = vmatmul.mubr.msk.f32.vlgmr.msra.gmra.mxu1 %vm462_vm2, %v1132_v42 }
 0x4cf   :  { %1327 = vmatpush1.msra.mxu0 %v2434_v24  ;;  %2137 = vmatpush3.msra.mxu1 %v2439_v25 }
 0x4d0   :  { %1328 = vmatprep.subr.mxu0 %v2446_v26  ;;  %2138 = vmatprep.subr.mxu1 %v2309_v20 }
 0x4d1   :  { %1329 = vmatpush1.msra.mxu0 %v2460_v30  ;;  %2139 = vmatpush3.msra.mxu1 %v2466_v31 }
 0x4d2   :  { %1330 = vmatprep.subr.mxu0 %v2473_v32  ;;  %2140 = vmatprep.subr.mxu1 %v2309_v20 }
 0x4d3   :  { %1331 = vmatpush1.msra.mxu0 %v2486_v39  ;;  %2141 = vmatpush3.msra.mxu1 %v2499_v44 }
 0x4d4   :  { %1332 = vmatprep.subr.mxu0 %v2494_v43  ;;  %2142 = vmatprep.subr.mxu1 %v2309_v20 }
 0x4d5   :  { %1333 = vmatpush1.msra.mxu0 %v2507_v46  ;;  %1366 = vmatprep.mubr.f32.mxu0 %v2309_v20 }
 0x4d6   :  { %2143 = vmatpush3.msra.mxu1 %v2519_v50  ;;  %2144 = vmatprep.mubr.msk.f32.mxu1 %vm2310_vm1, %v2309_v20 }
 0x4d7   :  { %1492 = vmatprep.subr.mxu0 %v2421_v21  ;;  %2147 = vmatprep.subr.mxu1 %v2309_v20 }
 0x58e   :  { %v1202_v5 = vpop.f32.mrf.mxu0  ;;  %v1273_v45 = vpop.f32.mrf.mxu1 }
 0x58f   :  { %v1277_v56 = vadd.f32 %v1202_v5, %v2600_v36  ;;  %v1291_v1 = vadd.f32 %v2619_v18, %v1273_v45 }
 0x590   :  { %v2135_v0 = vpop.f32.mrf.mxu1  ;;  %v1204_v49 = vpop.f32.mrf.mxu0 }
 0x591   :  { %v1963_v47 = vmul.f32 -1.442695, %v1277_v56  ;;  %v1284_v52 = vadd.f32 %v1204_v49, %v2602_v41 }
 0x593   :  { %2228 = vpow2.f32 %v1963_v47  ;;  %v1964_v54 = vmul.f32 -1.442695, %v1284_v52 }
 0x595   :  { %2230 = vpow2.f32 %v1964_v54 }
 0x5a0   :  { %v2229_v11 = vpop.eup %2228 }
 0x5a1   :  { %v1281_v55 = vadd.f32 1.0, %v2229_v11 }
 0x5a2   :  { %v2231_v58 = vpop.eup %2230 }
 0x5a3   :  { %2232 = vrcp.f32 %v1281_v55  ;;  %v1288_v60 = vadd.f32 1.0, %v2231_v58  ;;  %v1800_v55 = vld [vmem:[%s2809_s5 + $0x18] sm:$0xff]  ;;  %v1798_v58 = vld [vmem:[%s2809_s5 + $0x8] sm:$0xff] }
 0x5a5   :  { %2234 = vrcp.f32 %v1288_v60  ;;  %v1797_v60 = vld [vmem:[%s2809_s5] sm:$0xff] }
 0x5b0   :  { %v2233_v15 = vpop.eup %2232 }
 0x5b1   :  { %v1292_v6 = vmul.f32 %v2233_v15, %v1291_v1 }
 0x5b2   :  { %v2235_v9 = vpop.eup %2234 }
 0x5b3   :  { %v1293_v36 = vadd.f32 %v1292_v6, %v2588_v17  ;;  %v1295_v62 = vsub.f32 1.0, %v2235_v9  ;;  %v1297_v41 = vmul.f32 %v2235_v9, %v1132_v42 }
 0x5b5   :  { %2236 = vtanh.f32 %v1293_v36 }
 0x5c2   :  { %v2237_v10 = vpop.eup %2236 }
 0x5c3   :  { %v1296_v12 = vmul.f32 %v2237_v10, %v1295_v62 }
 0x5c5   :  { %v1298_v14 = vadd.f32 %v1297_v41, %v1296_v12 }
 0x5c7   :  { %1965 = vmatmul.mubr.msk.f32.vlgmr.msra.gmra.mxu0 %vm462_vm2, %v1298_v14  ;;  %2145 = vmatmul.mubr.msk.f32.vlgmr.msra.gmra.mxu1 %vm462_vm2, %v1298_v14 }
 0x5c8   :  { %1493 = vmatpush1.msra.mxu0 %v2434_v24  ;;  %2148 = vmatpush3.msra.mxu1 %v2439_v25 }
 0x5c9   :  { %1494 = vmatprep.subr.mxu0 %v2446_v26  ;;  %2149 = vmatprep.subr.mxu1 %v2309_v20 }
 0x5ca   :  { %1495 = vmatpush1.msra.mxu0 %v2460_v30  ;;  %2150 = vmatpush3.msra.mxu1 %v2466_v31 }
 0x5cb   :  { %1496 = vmatprep.subr.mxu0 %v2473_v32  ;;  %2151 = vmatprep.subr.mxu1 %v2309_v20 }
 0x5cc   :  { %1497 = vmatpush1.msra.mxu0 %v2486_v39  ;;  %2152 = vmatpush3.msra.mxu1 %v2499_v44 }
 0x5cd   :  { %1498 = vmatprep.subr.mxu0 %v2494_v43  ;;  %2153 = vmatprep.subr.mxu1 %v2309_v20 }
 0x5ce   :  { %1499 = vmatpush1.msra.mxu0 %v2507_v46  ;;  %1532 = vmatprep.mubr.f32.mxu0 %v2309_v20 }
 0x5cf   :  { %2154 = vmatpush3.msra.mxu1 %v2519_v50  ;;  %2155 = vmatprep.mubr.msk.f32.mxu1 %vm2310_vm1, %v2309_v20 }
 0x5d0   :  { %1658 = vmatprep.subr.mxu0 %v2421_v21  ;;  %2158 = vmatprep.subr.mxu1 %v2309_v20 }
 0x687   :  { %v1368_v17 = vpop.f32.mrf.mxu0  ;;  %v1439_v3 = vpop.f32.mrf.mxu1 }
 0x688   :  { %v1443_v16 = vadd.f32 %v1368_v17, %v2604_v48  ;;  %v1457_v21 = vadd.f32 %v2619_v18, %v1439_v3 }
 0x689   :  { %v2146_v22 = vpop.f32.mrf.mxu1  ;;  %v1370_v63 = vpop.f32.mrf.mxu0 }
 0x68a   :  { %v1967_v27 = vmul.f32 -1.442695, %v1443_v16  ;;  %v1450_v7 = vadd.f32 %v1370_v63, %v2606_v53 }
 0x68c   :  { %2238 = vpow2.f32 %v1967_v27  ;;  %v1968_v29 = vmul.f32 -1.442695, %v1450_v7 }
 0x68e   :  { %2240 = vpow2.f32 %v1968_v29 }
 0x699   :  { %v2239_v61 = vpop.eup %2238 }
 0x69a   :  { %v1447_v2 = vadd.f32 1.0, %v2239_v61 }
 0x69b   :  { %v2241_v33 = vpop.eup %2240 }
 0x69c   :  { %2242 = vrcp.f32 %v1447_v2  ;;  %v1454_v19 = vadd.f32 1.0, %v2241_v33  ;;  %v1977_v2 = vld [vmem:[%s2809_s5 + $0x20] ss:$0 sm:$0xff] }
 0x69e   :  { %2244 = vrcp.f32 %v1454_v19 }
 0x6a9   :  { %v2243_v35 = vpop.eup %2242 }
 0x6aa   :  { %v1458_v37 = vmul.f32 %v2243_v35, %v1457_v21  ;;  %v1898_v35 = vstv %s1982_s24 }
 0x6ab   :  { %v2245_v38 = vpop.eup %2244 }
 0x6ac   :  { %v1459_v48 = vadd.f32 %v1458_v37, %v2583_v13  ;;  %v1461_v40 = vsub.f32 1.0, %v2245_v38  ;;  %v1463_v53 = vmul.f32 %v2245_v38, %v1298_v14 }
 0x6ae   :  { %2246 = vtanh.f32 %v1459_v48 }
 0x6bb   :  { %v2247_v28 = vpop.eup %2246 }
 0x6bc   :  { %v1462_v42 = vmul.f32 %v2247_v28, %v1461_v40 }
 0x6be   :  { %v1464_v5 = vadd.f32 %v1463_v53, %v1462_v42 }
 0x6c0   :  { %1969 = vmatmul.mubr.msk.f32.vlgmr.msra.gmra.mxu0 %vm462_vm2, %v1464_v5  ;;  %2156 = vmatmul.mubr.msk.f32.vlgmr.msra.gmra.mxu1 %vm462_vm2, %v1464_v5 }
 0x6c1   :  { %1659 = vmatpush1.msra.mxu0 %v2434_v24  ;;  %2159 = vmatpush3.msra.mxu1 %v2439_v25 }
 0x6c2   :  { %1660 = vmatprep.subr.mxu0 %v2446_v26  ;;  %2160 = vmatprep.subr.mxu1 %v2309_v20 }
 0x6c3   :  { %1661 = vmatpush1.msra.mxu0 %v2460_v30  ;;  %2161 = vmatpush3.msra.mxu1 %v2466_v31 }
 0x6c4   :  { %1662 = vmatprep.subr.mxu0 %v2473_v32  ;;  %2162 = vmatprep.subr.mxu1 %v2309_v20 }
 0x6c5   :  { %1663 = vmatpush1.msra.mxu0 %v2486_v39  ;;  %2163 = vmatpush3.msra.mxu1 %v2499_v44 }
 0x6c6   :  { %1664 = vmatprep.subr.mxu0 %v2494_v43  ;;  %2164 = vmatprep.subr.mxu1 %v2309_v20 }
 0x6c7   :  { %1665 = vmatpush1.msra.mxu0 %v2507_v46  ;;  %1698 = vmatprep.mubr.f32.mxu0 %v2309_v20 }
 0x6c8   :  { %2165 = vmatpush3.msra.mxu1 %v2519_v50  ;;  %2166 = vmatprep.mubr.msk.f32.mxu1 %vm2310_vm1, %v2309_v20 }
 0x6c9   :  { %2169 = vmatprep.subr.mxu0 %v2309_v20 }
 0x780   :  { %v1534_v24 = vpop.f32.mrf.mxu0  ;;  %v1605_v25 = vpop.f32.mrf.mxu1 }
 0x781   :  { %v1609_v26 = vadd.f32 %v1534_v24, %v2608_v57  ;;  %v1623_v45 = vadd.f32 %v2619_v18, %v1605_v25 }
 0x782   :  { %v2157_v30 = vpop.f32.mrf.mxu1  ;;  %v1536_v32 = vpop.f32.mrf.mxu0 }
 0x783   :  { %v1971_v31 = vmul.f32 -1.442695, %v1609_v26  ;;  %v1616_v39 = vadd.f32 %v1536_v32, %v2610_v59 }
 0x785   :  { %2248 = vpow2.f32 %v1971_v31  ;;  %v1972_v43 = vmul.f32 -1.442695, %v1616_v39 }
 0x787   :  { %2250 = vpow2.f32 %v1972_v43 }
 0x792   :  { %v2249_v44 = vpop.eup %2248 }
 0x793   :  { %v1613_v46 = vadd.f32 1.0, %v2249_v44 }
 0x794   :  { %v2251_v50 = vpop.eup %2250 }
 0x795   :  { %2252 = vrcp.f32 %v1613_v46  ;;  %v1620_v13 = vadd.f32 1.0, %v2251_v50 }
 0x797   :  { %2254 = vrcp.f32 %v1620_v13 }
 0x7a2   :  { %v2253_v56 = vpop.eup %2252 }
 0x7a3   :  { %v1624_v0 = vmul.f32 %v2253_v56, %v1623_v45 }
 0x7a4   :  { %v2255_v47 = vpop.eup %2254 }
 0x7a5   :  { %v1625_v57 = vadd.f32 %v1624_v0, %v2598_v34  ;;  %v1627_v49 = vsub.f32 1.0, %v2255_v47  ;;  %v1629_v59 = vmul.f32 %v2255_v47, %v1464_v5  ;;  %v1799_v34 = vld [vmem:[%s2809_s5 + $0x10] sm:$0xff]  ;;  %s2284_s5 = scalar_lea.vmem %s1914_s28, 128 }
 0x7a6   :  { %p2285_p5 = scmp.ne.s32.totalorder %s1914_s28, %s2284_s5  ;;  %p2290_p7 = scmp.lt.s32.totalorder %s2284_s5, %s2284_s5 }
 0x7a7   :  { %2256 = vtanh.f32 %v1625_v57 }
 0x7a8   :  { %p2291_p8 = por %p2290_p7, %p2289_p6 }
 0x7aa   :  { %p2292_p9 = pnand %p2291_p8, %p2285_p5 }
 0x7b4   :  { %v2257_v52 = vpop.eup %2256 }
 0x7b5   :  { %v1628_v54 = vmul.f32 %v2257_v52, %v1627_v49 }
 0x7b7   :  { %v1630_v11 = vadd.f32 %v1629_v59, %v1628_v54 }
 0x7b9   :  { %1973 = vmatmul.mubr.msk.f32.vlgmr.msra.gmra.mxu0 %vm462_vm2, %v1630_v11  ;;  %2167 = vmatmul.mubr.msk.f32.vlgmr.msra.gmra.mxu1 %vm462_vm2, %v1630_v11 }
 0x7ba   :  { %2177 = vmatprep.mubr.msk.f32.mxu0 %vm2310_vm1, %v2309_v20  ;;  %2170 = vmatpush3.msra.mxu0 %v1800_v55 }
 0x7bb   :  { %2171 = vmatprep.subr.mxu0 %v2309_v20 }
 0x7bc   :  { %2172 = vmatpush3.msra.mxu0 %v1799_v34 }
 0x7bd   :  { %2173 = vmatprep.subr.mxu0 %v2309_v20 }
 0x7be   :  { %2174 = vmatpush3.msra.mxu0 %v1798_v58 }
 0x7bf   :  { %2175 = vmatprep.subr.mxu0 %v2309_v20 }
 0x7c0   :  { %2176 = vmatpush3.msra.mxu0 %v1797_v60 }
 0x879   :  { %v1700_v1 = vpop.f32.mrf.mxu0  ;;  %v1771_v15 = vpop.f32.mrf.mxu1 }
 0x87a   :  { %v1775_v6 = vadd.f32 %v1700_v1, %v2612_v4  ;;  %v1789_v20 = vadd.f32 %v2619_v18, %v1771_v15 }
 0x87b   :  { %v2168_v36 = vpop.f32.mrf.mxu1  ;;  %v1702_v62 = vpop.f32.mrf.mxu0 }
 0x87c   :  { %v1975_v9 = vmul.f32 -1.442695, %v1775_v6  ;;  %v1782_v10 = vadd.f32 %v1702_v62, %v2614_v8 }
 0x87e   :  { %2258 = vpow2.f32 %v1975_v9  ;;  %v1976_v12 = vmul.f32 -1.442695, %v1782_v10 }
 0x880   :  { %2260 = vpow2.f32 %v1976_v12 }
 0x88b   :  { %v2259_v41 = vpop.eup %2258 }
 0x88c   :  { %v1779_v14 = vadd.f32 1.0, %v2259_v41 }
 0x88d   :  { %v2261_v17 = vpop.eup %2260 }
 0x88e   :  { %2262 = vrcp.f32 %v1779_v14  ;;  %v1786_v3 = vadd.f32 1.0, %v2261_v17 }
 0x890   :  { %2264 = vrcp.f32 %v1786_v3 }
 0x89b   :  { %v2263_v16 = vpop.eup %2262 }
 0x89c   :  { %v1790_v22 = vmul.f32 %v2263_v16, %v1789_v20 }
 0x89d   :  { %v2265_v27 = vpop.eup %2264 }
 0x89e   :  { %v1791_v4 = vadd.f32 %v1790_v22, %v2593_v23  ;;  %v1793_v63 = vsub.f32 1.0, %v2265_v27  ;;  %v1795_v8 = vmul.f32 %v2265_v27, %v1630_v11 }
 0x8a0   :  { %2266 = vtanh.f32 %v1791_v4 }
 0x8ad   :  { %v2267_v7 = vpop.eup %2266 }
 0x8ae   :  { %v1794_v29 = vmul.f32 %v2267_v7, %v1793_v63 }
 0x8b0   :  { %v1796_v61 = vadd.f32 %v1795_v8, %v1794_v29 }
 0x8b2   :  { %2178 = vmatmul.mubr.msk.f32.vlgmr.msra.gmra.mxu0 %vm462_vm2, %v1796_v61 }
 0x972   :  { %v1875_v18 = vpop.f32.mrf.mxu0 }
 0x973   :  { %v1876_v33 = vadd.f32 %v1977_v2, %v1875_v18 }
 0x974   :  { %v2179_v19 = vpop.f32.mrf.mxu0 }
 0x975   :  { %v1895_v21 = vmul.f32 0.7, %v1876_v33 }
 0x977   :  { %v1896_v23 = vadd.f32 %v1895_v21, %v2526_v51 }
 0x979   :  { %v1899_v37 = vadd.f32 %v1898_v35, %v1896_v23 }
 0x97b   :  { %v1983_v48 = vmul.f32 -1.442695, %v1899_v37 }
 0x97d   :  { %2268 = vpow2.f32 %v1983_v48 }
 0x98a   :  { %v2269_v38 = vpop.eup %2268 }
 0x98b   :  { %v1903_v40 = vadd.f32 1.0, %v2269_v38 }
 0x98d   :  { %2270 = vrcp.f32 %v1903_v40 }
 0x99a   :  { %v2271_v28 = vpop.eup %2270 }
 0x99b   :  { %1906 = vst.msk [vmem:[#allocation5] sm:$0xff] %vm54_vm0, %v2271_v28 }
 0x99c   :  { %2295 = shalt.err (!%p2292_p9)
}
 0x99d   :  { %1916 = dma.vmem_to_hbm [thread:$0]  %s1914_s28, 128, %s2811_s7, [#allocation3]  }
 0x99e   :  { %2306 = dma.done.wait [#allocation3], 128  }
 0x99f   :  { %2307 = vsyncadd [#allocation3], 4294967168 }
 0x9a0   :  { %1920 = vsyncpa [#allocation3], 1 }
 0x9a1   :  { %1921 = vsyncpa [#allocation4], 1 }

</bundles_post_ra>
